<compile_context>
chip_gen: v6e
topology: v6e:2x2x1
jax: 0.10.0
libtpu: 0.0.40
codegen_flags: <defaults>
</compile_context>

<pallas_src>
import jax
import jax.numpy as jnp
from jax.experimental import pallas as pl
from jax.experimental.pallas import tpu as pltpu

_EPS = 1e-12          # matches torch.nn.functional.normalize default eps
_EPS_SQ = _EPS * _EPS
_LANE = 128
_SUBLANE = 8


def _round_up(x, m):
    return ((x + m - 1) // m) * m


def _vmem_limit(estimated_bytes):
    # Explicit scoped-VMEM limit (v5e default is only 16 MiB); keep <= 32 MiB so it
    # is valid on every generation including v7x (64 MiB physical VMEM per core).
    return int(min(32 << 20, max(16 << 20, 2 * estimated_bytes)))


# ----------------------- forward(): gather positions / rotations -----------------------
def forward_kernel(idx_ref, pos_t_ref, rot_t_ref, pos_out_ref, rot_out_ref):
    """Lane-dense one-hot MXU gather.

    idx_ref:  (1, T) int32     pos_t_ref: (3, C) f32   rot_t_ref: (6, C) f32
    pos_out_ref: (3, T) f32    rot_out_ref: (6, T) f32
    """
    idx = idx_ref[...]                                               # (1, T)
    c = pos_t_ref.shape[1]
    cam_ids = jax.lax.broadcasted_iota(jnp.int32, (c, 1), 0)         # (C, 1)
    onehot = (cam_ids == idx).astype(jnp.float32)                    # (C, T) via broadcast
    pos_out_ref[...] = jnp.dot(pos_t_ref[...], onehot,
                               preferred_element_type=jnp.float32)   # (3, T)
    rot_out_ref[...] = jnp.dot(rot_t_ref[...], onehot,
                               preferred_element_type=jnp.float32)   # (6, T)


def _forward_tile(n_pad, c):
    # C-aware lane-tile: keep the (C, tile) f32 one-hot intermediate within an ~8 MiB
    # budget (fits v5e's 16 MiB scoped default and v7x's smaller VMEM), while leaving
    # >= ~4 grid steps for megacore sharding when there is enough work.
    onehot_budget = 8 << 20
    cap = max(_LANE, min(8192, ((onehot_budget // (4 * c)) // _LANE) * _LANE))
    want = max(_LANE, _round_up(pl.cdiv(n_pad, 4), _LANE))
    return min(cap, want, n_pad)


def camera_optimizer_forward(camera_indices, positions, rotations):
    n = camera_indices.shape[0]
    c = positions.shape[0]
    n_pad = _round_up(n, _LANE)                  # pad only to the 128-lane boundary
    tile = _forward_tile(n_pad, c)
    grid = pl.cdiv(n_pad, tile)                  # ragged last block handled by Pallas

    idx = jnp.pad(camera_indices.astype(jnp.int32), (0, n_pad - n)).reshape(1, n_pad)
    pos_t = positions.astype(jnp.float32).T      # (3, C), resident across the grid
    rot_t = rotations.astype(jnp.float32).T      # (6, C)

    est = 4 * c * tile + 2 * 4 * tile + 4 * 4 * 9 * tile + 2 * 4 * 9 * c

    pos_o, rot_o = pl.pallas_call(
        forward_kernel,
        out_shape=(jax.ShapeDtypeStruct((3, n_pad), jnp.float32),
                   jax.ShapeDtypeStruct((6, n_pad), jnp.float32)),
        grid=(grid,),
        in_specs=[pl.BlockSpec((1, tile), lambda i: (0, i)),
                  pl.BlockSpec((3, c), lambda i: (0, 0)),
                  pl.BlockSpec((6, c), lambda i: (0, 0))],
        out_specs=(pl.BlockSpec((3, tile), lambda i: (0, i)),
                   pl.BlockSpec((6, tile), lambda i: (0, i))),
        compiler_params=pltpu.CompilerParams(
            dimension_semantics=("parallel",),
            vmem_limit_bytes=_vmem_limit(est)),
        cost_estimate=pl.CostEstimate(
            flops=2 * n_pad * c * 9,
            transcendentals=0,
            bytes_accessed=n_pad * (4 + 9 * 4) + c * 9 * 4),
    )(idx, pos_t, rot_t)

    # Slice before transposing (single small transpose pass each, no (N, 9) split).
    return pos_o[:, :n].T, rot_o[:, :n].T


# ------------- apply_to_raybundle(): gather + 6D->R + rotate dirs + shift origins -------------
def apply_kernel(pos_s_ref, rot_s_ref, idx_ref, org_ref, dir_ref, new_org_ref, new_dir_ref):
    """Dense-plane version.

    pos_s_ref: (3*C,) f32 SMEM  [cam*3 + k]      rot_s_ref: (6*C,) f32 SMEM  [cam*6 + k]
    idx_ref:   (S, 128) int32
    org_ref / dir_ref / new_org_ref / new_dir_ref: (3, S, 128) f32 feature-major planes
    """
    s_tile = idx_ref.shape[0]
    num_cams = pos_s_ref.shape[0] // 3
    chunk = _SUBLANE if s_tile % _SUBLANE == 0 else s_tile
    n_chunks = s_tile // chunk

    def body(j, carry):
        r0 = pl.multiple_of(j * chunk, chunk)
        rows = pl.ds(r0, chunk)
        idx = idx_ref[rows, :]                                       # (chunk, 128) dense

        # Per-camera select gather straight into dense planes (tiny table in SMEM).
        # O(C) VPU work per ray plane — fine for small/moderate camera counts.
        # TODO(synk): switch to a DMA row gather for C >~ 512.
        zeros = jnp.zeros(idx.shape, jnp.float32)
        g = [zeros] * 9                                              # px,py,pz,a1(3),a2(3)
        for cam in range(num_cams):
            m = idx == cam
            for k in range(3):
                g[k] = jnp.where(m, pos_s_ref[cam * 3 + k], g[k])
            for k in range(6):
                g[3 + k] = jnp.where(m, rot_s_ref[cam * 6 + k], g[3 + k])
        px, py, pz, a1x, a1y, a1z, a2x, a2y, a2z = g

        # rotation_6d_to_matrix (rows of R are b1, b2, b3).  rsqrt(max(|.|^2, eps^2))
        # reproduces F.normalize's max(norm, eps) exactly; rsqrt runs on the EUP.
        inv1 = jax.lax.rsqrt(jnp.maximum(a1x * a1x + a1y * a1y + a1z * a1z, _EPS_SQ))
        b1x, b1y, b1z = a1x * inv1, a1y * inv1, a1z * inv1

        proj = b1x * a2x + b1y * a2y + b1z * a2z
        b2x = a2x - proj * b1x
        b2y = a2y - proj * b1y
        b2z = a2z - proj * b1z
        inv2 = jax.lax.rsqrt(jnp.maximum(b2x * b2x + b2y * b2y + b2z * b2z, _EPS_SQ))
        b2x, b2y, b2z = b2x * inv2, b2y * inv2, b2z * inv2

        b3x = b1y * b2z - b1z * b2y
        b3y = b1z * b2x - b1x * b2z
        b3z = b1x * b2y - b1y * b2x

        # bmm(R, d): per-ray dot of each row of R with d, all on dense (chunk,128) planes.
        dx = dir_ref[0, rows, :]
        dy = dir_ref[1, rows, :]
        dz = dir_ref[2, rows, :]
        new_dir_ref[0, rows, :] = b1x * dx + b1y * dy + b1z * dz
        new_dir_ref[1, rows, :] = b2x * dx + b2y * dy + b2z * dz
        new_dir_ref[2, rows, :] = b3x * dx + b3y * dy + b3z * dz

        new_org_ref[0, rows, :] = org_ref[0, rows, :] + px
        new_org_ref[1, rows, :] = org_ref[1, rows, :] + py
        new_org_ref[2, rows, :] = org_ref[2, rows, :] + pz
        return carry

    jax.lax.fori_loop(0, n_chunks, body, 0)


def _pick_tile_rows(nb):
    # Rows of 128 rays per grid step.  Big tiles amortize per-step overhead; aim for
    # >= 4 grid steps when there is work so v7x's two TensorCores both get shards.
    if nb <= _SUBLANE:
        return nb                                           # single block == full dim
    want = max(_SUBLANE, _round_up(pl.cdiv(nb, 4), _SUBLANE))
    return min(64, want)                                    # 64 * 128 = 8192 rays / step


def camera_optimizer_apply_to_raybundle(camera_indices, positions, rotations, origins, directions):
    n = camera_indices.shape[0]
    c = positions.shape[0]
    n_pad = _round_up(n, _LANE)                 # only pad to the 128-lane boundary;
    nb = n_pad // _LANE                         # it fuses with the required transpose/cast
    pad = n_pad - n

    idx2d = jnp.pad(camera_indices.astype(jnp.int32), (0, pad)).reshape(nb, _LANE)
    org_t = jnp.pad(origins.astype(jnp.float32).T, ((0, 0), (0, pad))).reshape(3, nb, _LANE)
    dir_t = jnp.pad(directions.astype(jnp.float32).T, ((0, 0), (0, pad))).reshape(3, nb, _LANE)
    pos_flat = positions.astype(jnp.float32).reshape(-1)    # (3*C,) -> SMEM via prefetch
    rot_flat = rotations.astype(jnp.float32).reshape(-1)    # (6*C,) -> SMEM via prefetch

    s_tile = _pick_tile_rows(nb)
    grid = pl.cdiv(nb, s_tile)                               # ragged last block OK

    est = 2 * 4 * _LANE * s_tile * (1 + 4 * 3)               # double-buffered blocks

    grid_spec = pltpu.PrefetchScalarGridSpec(
        num_scalar_prefetch=2,
        grid=(grid,),
        in_specs=[pl.BlockSpec((s_tile, _LANE), lambda i, p, r: (i, 0)),
                  pl.BlockSpec((3, s_tile, _LANE), lambda i, p, r: (0, i, 0)),
                  pl.BlockSpec((3, s_tile, _LANE), lambda i, p, r: (0, i, 0))],
        out_specs=(pl.BlockSpec((3, s_tile, _LANE), lambda i, p, r: (0, i, 0)),
                   pl.BlockSpec((3, s_tile, _LANE), lambda i, p, r: (0, i, 0))),
    )

    new_org_t, new_dir_t = pl.pallas_call(
        apply_kernel,
        out_shape=(jax.ShapeDtypeStruct((3, nb, _LANE), jnp.float32),
                   jax.ShapeDtypeStruct((3, nb, _LANE), jnp.float32)),
        grid_spec=grid_spec,
        compiler_params=pltpu.CompilerParams(
            dimension_semantics=("parallel",),
            vmem_limit_bytes=_vmem_limit(est)),
        cost_estimate=pl.CostEstimate(
            flops=(10 * c + 45) * n_pad,
            transcendentals=2 * n_pad,
            bytes_accessed=n_pad * (4 + 4 * 3 * 4) + 9 * c * 4),
    )(pos_flat, rot_flat, idx2d, org_t, dir_t)

    new_org = new_org_t.reshape(3, n_pad)[:, :n].T           # slice before transpose
    new_dir = new_dir_t.reshape(3, n_pad)[:, :n].T
    return new_org, new_dir


# ----------------------------- pure-JAX reference for checking -----------------------------
def _ref_rotation_6d_to_matrix(d6):
    a1, a2 = d6[..., :3], d6[..., 3:]
    b1 = a1 / jnp.maximum(jnp.linalg.norm(a1, axis=-1, keepdims=True), _EPS)
    b2 = a2 - jnp.sum(b1 * a2, axis=-1, keepdims=True) * b1
    b2 = b2 / jnp.maximum(jnp.linalg.norm(b2, axis=-1, keepdims=True), _EPS)
    b3 = jnp.cross(b1, b2)
    return jnp.stack((b1, b2, b3), axis=-2)


def _ref_forward(camera_indices, positions, rotations):
    return positions[camera_indices], rotations[camera_indices]


def _ref_apply(camera_indices, positions, rotations, origins, directions):
    pos, rot = _ref_forward(camera_indices, positions, rotations)
    R = _ref_rotation_6d_to_matrix(rot)
    new_dir = jnp.einsum("nij,nj->ni", R, directions)
    return origins + pos, new_dir


if __name__ == "__main__":
    num_cameras = 8
    num_rays = 16

    key = jax.random.PRNGKey(0)
    k1, k2, k3, k4, k5 = jax.random.split(key, 5)

    # nn.Parameter shapes from __init__: (num_cameras, 3) and (num_cameras, 6).
    # (PyTorch inits them to zeros; use small deterministic random values so the
    #  rotation path is non-degenerate in this synthetic test.)
    positions = 0.1 * jax.random.normal(k1, (num_cameras, 3), dtype=jnp.float32)
    rotations = jax.random.normal(k2, (num_cameras, 6), dtype=jnp.float32)

    camera_indices = jax.random.randint(k3, (num_rays,), 0, num_cameras, dtype=jnp.int32)
    origins = jax.random.normal(k4, (num_rays, 3), dtype=jnp.float32)
    directions = jax.random.normal(k5, (num_rays, 3), dtype=jnp.float32)

    # forward()
    pos_out, rot_out = camera_optimizer_forward(camera_indices, positions, rotations)
    pos_out, rot_out = jax.block_until_ready((pos_out, rot_out))
    pos_ref, rot_ref = _ref_forward(camera_indices, positions, rotations)
    assert pos_out.shape == (num_rays, 3) and rot_out.shape == (num_rays, 6)
    assert jnp.allclose(pos_out, pos_ref, atol=1e-6), "forward positions mismatch"
    assert jnp.allclose(rot_out, rot_ref, atol=1e-6), "forward rotations mismatch"

    # apply_to_raybundle()
    new_org, new_dir = camera_optimizer_apply_to_raybundle(
        camera_indices, positions, rotations, origins, directions)
    new_org, new_dir = jax.block_until_ready((new_org, new_dir))
    org_ref, dir_ref = _ref_apply(camera_indices, positions, rotations, origins, directions)
    assert new_org.shape == (num_rays, 3) and new_dir.shape == (num_rays, 3)
    assert jnp.allclose(new_org, org_ref, atol=1e-5), "apply origins mismatch"
    assert jnp.allclose(new_dir, dir_ref, atol=1e-5), "apply directions mismatch"

    print("KERNEL_OK")
</pallas_src>

<mosaic_0001>
module attributes {stable_mosaic.version = 11 : i64} {
  func.func @forward_kernel(%arg0: i32, %arg1: memref<1x128xi32, #tpu.memory_space<vmem>>, %arg2: memref<3x8xf32, #tpu.memory_space<vmem>>, %arg3: memref<6x8xf32, #tpu.memory_space<vmem>>, %arg4: memref<3x128xf32, #tpu.memory_space<vmem>>, %arg5: memref<6x128xf32, #tpu.memory_space<vmem>>) attributes {dimension_semantics = [#tpu.dimension_semantics<parallel>], iteration_bounds = array<i64: 1>, scalar_prefetch = 0 : i64, scratch_operands = 0 : i64, tpu.core_type = #tpu.core_type<tc>, window_params = [{transform_indices = @transform_0, window_bounds = array<i64: 1, 128>}, {pipeline_mode = #tpu.pipeline_mode<synchronous>, transform_indices = @transform_1, window_bounds = array<i64: 3, 8>}, {pipeline_mode = #tpu.pipeline_mode<synchronous>, transform_indices = @transform_2, window_bounds = array<i64: 6, 8>}, {transform_indices = @transform_3, window_bounds = array<i64: 3, 128>}, {transform_indices = @transform_4, window_bounds = array<i64: 6, 128>}]} {
    %c0 = arith.constant 0 : index
    %c0_0 = arith.constant 0 : index
    %0 = vector.load %arg1[%c0, %c0_0] : memref<1x128xi32, #tpu.memory_space<vmem>>, vector<1x128xi32>
    %1 = tpu.iota {dimensions = array<i32: 0>} : vector<8x1xi32>
    %2 = vector.broadcast %1 : vector<8x1xi32> to vector<8x128xi32>
    %3 = vector.broadcast %0 : vector<1x128xi32> to vector<8x128xi32>
    %4 = arith.cmpi eq, %2, %3 : vector<8x128xi32>
    %5 = arith.extui %4 : vector<8x128xi1> to vector<8x128xi32>
    %6 = arith.sitofp %5 : vector<8x128xi32> to vector<8x128xf32>
    %c0_1 = arith.constant 0 : index
    %c0_2 = arith.constant 0 : index
    %7 = vector.load %arg2[%c0_1, %c0_2] : memref<3x8xf32, #tpu.memory_space<vmem>>, vector<3x8xf32>
    %cst = arith.constant dense<0.000000e+00> : vector<3x128xf32>
    %8 = tpu.matmul %7, %6, %cst {dimension_numbers = #tpu.dot_dimension_numbers<[1], [0], [0], [1], [0, 0, 1, 1], [], []>} : vector<3x8xf32>, vector<8x128xf32>, vector<3x128xf32> -> vector<3x128xf32>
    %c0_3 = arith.constant 0 : index
    %c0_4 = arith.constant 0 : index
    %9 = vector.load %arg4[%c0_3, %c0_4] : memref<3x128xf32, #tpu.memory_space<vmem>>, vector<3x128xf32>
    tpu.vector_store %arg4[%c0_3, %c0_4], %8 {strides = array<i32>} : memref<3x128xf32, #tpu.memory_space<vmem>>, vector<3x128xf32>,
    %c0_5 = arith.constant 0 : index
    %c0_6 = arith.constant 0 : index
    %10 = vector.load %arg3[%c0_5, %c0_6] : memref<6x8xf32, #tpu.memory_space<vmem>>, vector<6x8xf32>
    %cst_7 = arith.constant dense<0.000000e+00> : vector<6x128xf32>
    %11 = tpu.matmul %10, %6, %cst_7 {dimension_numbers = #tpu.dot_dimension_numbers<[1], [0], [0], [1], [0, 0, 1, 1], [], []>} : vector<6x8xf32>, vector<8x128xf32>, vector<6x128xf32> -> vector<6x128xf32>
    %c0_8 = arith.constant 0 : index
    %c0_9 = arith.constant 0 : index
    %12 = vector.load %arg5[%c0_8, %c0_9] : memref<6x128xf32, #tpu.memory_space<vmem>>, vector<6x128xf32>
    tpu.vector_store %arg5[%c0_8, %c0_9], %11 {strides = array<i32>} : memref<6x128xf32, #tpu.memory_space<vmem>>, vector<6x128xf32>,
    return
  }
  func.func @transform_0(%arg0: i32) -> (i32, i32) {
    %c0_i32 = arith.constant 0 : i32
    %c0_i32_0 = arith.constant 0 : i32
    return %c0_i32, %arg0 : i32, i32
  }
  func.func @transform_1(%arg0: i32) -> (i32, i32) {
    %c0_i32 = arith.constant 0 : i32
    %c0_i32_0 = arith.constant 0 : i32
    %c0_i32_1 = arith.constant 0 : i32
    return %c0_i32, %c0_i32_0 : i32, i32
  }
  func.func @transform_2(%arg0: i32) -> (i32, i32) {
    %c0_i32 = arith.constant 0 : i32
    %c0_i32_0 = arith.constant 0 : i32
    %c0_i32_1 = arith.constant 0 : i32
    return %c0_i32, %c0_i32_0 : i32, i32
  }
  func.func @transform_3(%arg0: i32) -> (i32, i32) {
    %c0_i32 = arith.constant 0 : i32
    %c0_i32_0 = arith.constant 0 : i32
    return %c0_i32, %arg0 : i32, i32
  }
  func.func @transform_4(%arg0: i32) -> (i32, i32) {
    %c0_i32 = arith.constant 0 : i32
    %c0_i32_0 = arith.constant 0 : i32
    return %c0_i32, %arg0 : i32, i32
  }
}

</mosaic_0001>

<bundles_post_ra>
// kernel: tpu_custom_call.1
= control target key start
LH: loop header
LB: loop body
LE: loop exit
PB: predicated region body
PF: predicated region fallthrough
CT: control target
= control target key end

     0   :  { %10 = vsyncpa [#allocation3], 0  ;;  %s428_s0 = inlined_call_operand.hbm [shape: s32[1,128], index: 0, kind: input, shape index: {}]   ;;  %s429_s1 = inlined_call_operand.hbm [shape: f32[3,8], index: 1, kind: input, shape index: {}]   ;;  %s430_s2 = inlined_call_operand.hbm [shape: f32[6,8], index: 2, kind: input, shape index: {}]   ;;  %s431_s3 = inlined_call_operand.hbm [shape: f32[3,128], index: 3, kind: output, shape index: {0}]   ;;  %s432_s4 = inlined_call_operand.hbm [shape: f32[6,128], index: 4, kind: output, shape index: {1}]  }
   0x1   :  { %11 = vsyncpa [#allocation6], 0 }
   0x2   :  { %12 = vsyncpa [#allocation4], 0 }
   0x3   :  { %13 = vsyncpa [#allocation10], 0  ;;  %s380_s15 = smov [#allocation5]   ;;  %s381_s17 = smov [#allocation2]  }
   0x4   :  { %s30_s16 = sshll.u32 %s380_s15, 4  ;;  %s20_s18 = sshll.u32 %s381_s17, 4  ;;  %s31_s16 = int_to_ptr.vmem [resolvable:$true] %s30_s16  ;;  %s21_s18 = int_to_ptr.vmem [resolvable:$true] %s20_s18 }
   0x5   :  { %s280_s19 = scalar_lea.vmem %s31_s16, 64  ;;  %p285_p1 = scmp.lt.s32.totalorder %s31_s16, %s31_s16 }
   0x6   :  { %p281_p0 = scmp.ne.s32.totalorder %s31_s16, %s280_s19  ;;  %p286_p2 = scmp.lt.s32.totalorder %s280_s19, %s280_s19 }
   0x8   :  { %p287_p3 = por %p286_p2, %p285_p1 }
   0xa   :  { %p288_p4 = pnand %p287_p3, %p281_p0 }
   0xc   :  { %291 = shalt.err (!%p288_p4)
}
   0xd   :  { %33 = dma.hbm_to_vmem [thread:$0]  %s429_s1, 64, %s31_s16, [#allocation6]  }
   0xe   :  { %s300_s22 = scalar_lea.vmem %s21_s18, 16  ;;  %s304_s23 = scalar_lea.vmem %s21_s18, 32 }
   0xf   :  { %p301_p5 = scmp.ne.s32.totalorder %s21_s18, %s300_s22  ;;  %p305_p6 = scmp.lt.s32.totalorder %s21_s18, %s21_s18 }
  0x10   :  { %p306_p7 = scmp.lt.s32.totalorder %s304_s23, %s300_s22 }
  0x12   :  { %p307_p8 = por %p306_p7, %p305_p6 }
  0x14   :  { %p308_p9 = pnand %p307_p8, %p301_p5 }
  0x16   :  { %311 = shalt.err (!%p308_p9)
}
  0x17   :  { %23 = dma.hbm_to_vmem [thread:$0]  %s428_s0, 16, %s21_s18, [#allocation3]  }
  0x18   :  { %s382_s26 = smov [#allocation7]  }
  0x19   :  { %s40_s27 = sshll.u32 %s382_s26, 4  ;;  %s41_s27 = int_to_ptr.vmem [resolvable:$true] %s40_s27 }
  0x1a   :  { %s320_s28 = scalar_lea.vmem %s41_s27, 128  ;;  %p325_p11 = scmp.lt.s32.totalorder %s41_s27, %s41_s27 }
  0x1b   :  { %p321_p10 = scmp.ne.s32.totalorder %s41_s27, %s320_s28  ;;  %p326_p12 = scmp.lt.s32.totalorder %s320_s28, %s320_s28 }
  0x1d   :  { %p327_p13 = por %p326_p12, %p325_p11 }
  0x1f   :  { %p328_p0 = pnand %p327_p13, %p321_p10 }
  0x21   :  { %331 = shalt.err (!%p328_p0)
}
  0x22   :  { %43 = dma.hbm_to_vmem [thread:$0]  %s430_s2, 128, %s41_s27, [#allocation6]  }
  0x23   :  { %372 = dma.done.wait [#allocation3], 16  }
  0x24   :  { %373 = vsyncadd [#allocation3], 4294967280 }
  0x25   :  { %374 = dma.done.wait [#allocation6], 192  }
  0x26   :  { %375 = vsyncadd [#allocation6], 4294967104  ;;  %v54_v0 = vlaneseq  ;;  %v383_v1 = vmov 0.0   ;;  %vm384_vm0 = vmmov 0   ;;  %vm64_vm1 = vcmask 64512   ;;  %s386_s0 = smov [#allocation8]  }
  0x27   :  { %254 = vmatprep.subr.mxu0 %v383_v1  ;;  %259 = vmatprep.subr.mxu1 %v383_v1  ;;  %v244_v3 = vld [vmem:[#allocation2] ss:$0 sm:$0xff]  ;;  %v63_v4 = vld [vmem:[#allocation5] sm:$0x7]  ;;  %v139_v5 = vld [vmem:[#allocation7] sm:$0x3f] }
  0x28   :  { %256 = vmatprep.mubr.msk.f32.mxu0 %vm384_vm0, %v383_v1  ;;  %261 = vmatprep.mubr.msk.f32.mxu1 %vm384_vm0, %v383_v1  ;;  %v55_v2 = vshrl.u32 %v54_v0, 7  ;;  %v385_v6 = vmov 1.0   ;;  %s220_s2 = sshll.u32 %s386_s0, 4  ;;  %s387_s30 = smov [#allocation9]   ;;  %s221_s2 = int_to_ptr.vmem [resolvable:$true] %s220_s2 }
  0x29   :  { %s230_s5 = sshll.u32 %s387_s30, 4  ;;  %s332_s6 = scalar_lea.vmem %s221_s2, 64  ;;  %s231_s5 = int_to_ptr.vmem [resolvable:$true] %s230_s5 }
  0x2a   :  { %vm60_vm2 = vcmp.eq.s32.totalorder %v55_v2, %v244_v3  ;;  %p333_p1 = scmp.ne.s32.totalorder %s221_s2, %s332_s6  ;;  %p337_p2 = scmp.lt.s32.totalorder %s221_s2, %s221_s2 }
  0x2b   :  { %255 = vmatpush3.msk.msra.mxu0 %vm60_vm2, %v385_v6  ;;  %260 = vmatpush3.msk.msra.mxu1 %vm60_vm2, %v385_v6  ;;  %p338_p3 = scmp.lt.s32.totalorder %s332_s6, %s332_s6 }
  0x2c   :  { %257 = vmatmul.mubr.msk.f32.vlgmr.msra.gmra.mxu0 %vm64_vm1, %v63_v4  ;;  %262 = vmatmul.mubr.msk.f32.vlgmr.msra.gmra.mxu1 %vm64_vm1, %v139_v5 }
  0x2d   :  { %p339_p4 = por %p338_p3, %p337_p2 }
  0x2f   :  { %p340_p5 = pnand %p339_p4, %p333_p1 }
  0xec   :  { %v134_v7 = vpop.f32.mrf.mxu0  ;;  %v209_v8 = vpop.f32.mrf.mxu1 }
  0xed   :  { %138 = vst [vmem:[#allocation8] sm:$0x7] %v134_v7  ;;  %213 = vst [vmem:[#allocation9] sm:$0x3f] %v209_v8 }
  0xee   :  { %v258_v9 = vpop.f32.mrf.mxu0  ;;  %v263_v10 = vpop.f32.mrf.mxu1 }
  0xef   :  { %343 = shalt.err (!%p340_p5)
}
  0xf0   :  { %223 = dma.vmem_to_hbm [thread:$0]  %s221_s2, 64, %s431_s3, [#allocation4]  }
  0xf1   :  { %s352_s9 = scalar_lea.vmem %s231_s5, 128  ;;  %p357_p7 = scmp.lt.s32.totalorder %s231_s5, %s231_s5 }
  0xf2   :  { %p353_p6 = scmp.ne.s32.totalorder %s231_s5, %s352_s9  ;;  %p358_p8 = scmp.lt.s32.totalorder %s352_s9, %s352_s9 }
  0xf4   :  { %p359_p9 = por %p358_p8, %p357_p7 }
  0xf6   :  { %p360_p10 = pnand %p359_p9, %p353_p6 }
  0xf8   :  { %363 = shalt.err (!%p360_p10)
}
  0xf9   :  { %233 = dma.vmem_to_hbm [thread:$0]  %s231_s5, 128, %s432_s4, [#allocation10]  }
  0xfa   :  { %376 = dma.done.wait [#allocation4], 64  }
  0xfb   :  { %377 = vsyncadd [#allocation4], 4294967232 }
  0xfc   :  { %378 = dma.done.wait [#allocation10], 128  }
  0xfd   :  { %379 = vsyncadd [#allocation10], 4294967168 }
  0xfe   :  { %240 = vsyncpa [#allocation3], 1 }
  0xff   :  { %241 = vsyncpa [#allocation6], 1 }
 0x100   :  { %242 = vsyncpa [#allocation4], 1 }
 0x101   :  { %243 = vsyncpa [#allocation10], 1 }

</bundles_post_ra>
